<compile_context>
chip_gen: v5e
topology: v5e:2x2
jax: 0.10.0
libtpu: 0.0.40
codegen_flags: <defaults>
</compile_context>

<pallas_src>
import jax
import jax.numpy as jnp
from jax.experimental import pallas as pl
from jax.experimental.pallas import tpu as pltpu


TM_MAX = 2048            # per-step batch-tile ceiling (fits v5e/v6e/v7x VMEM budgets)
MEGACORE_MIN_BATCH = 1024  # above this, force >=2 grid steps so v7x uses both TCs


def _round_up(x, m):
    return ((x + m - 1) // m) * m


# --------------------------------------------------------------------------- #
# Kernel                                                                      #
# --------------------------------------------------------------------------- #
def autoencoder_kernel(x_ref,
                       w1_ref, b1_ref,
                       w2_ref, b2_ref,
                       w3_ref, b3_ref,
                       w4_ref, b4_ref,
                       out_ref, code_ref):
    # x tile arrives as f32; cast to bf16 on the VPU (no extra HBM pass).
    x = x_ref[...].astype(jnp.bfloat16)

    # ----- encode -----
    h1 = jnp.dot(x, w1_ref[...], preferred_element_type=jnp.float32) + b1_ref[...]
    h1 = jnp.maximum(h1, 0.0)                                     # ReLU in f32 (VPU)
    code = jnp.dot(h1.astype(jnp.bfloat16), w2_ref[...],
                   preferred_element_type=jnp.float32) + b2_ref[...]
    # Store only the true embedding lanes (padded lanes are exact zeros).
    code_ref[...] = code[:, :code_ref.shape[1]].astype(code_ref.dtype)

    # ----- decode (uses the lane-padded code; padded lanes hit zero w3 rows) -----
    h2 = jnp.dot(code.astype(jnp.bfloat16), w3_ref[...],
                 preferred_element_type=jnp.float32) + b3_ref[...]
    h2 = jnp.maximum(h2, 0.0)
    logits = jnp.dot(h2.astype(jnp.bfloat16), w4_ref[...],
                     preferred_element_type=jnp.float32) + b4_ref[...]
    out_ref[...] = jax.nn.sigmoid(logits).astype(out_ref.dtype)   # sigmoid in f32 (EUP)


# --------------------------------------------------------------------------- #
# One-time parameter preparation                                              #
# --------------------------------------------------------------------------- #
def prepare_params(params):
    """Transpose weights to (in, out), zero-pad the embedding dim to 128 lanes
    (exact padding), cast weights to bf16 once; biases stay f32, shape (1, out)."""
    (w1, b1), (w2, b2), (w3, b3), (w4, b4) = params
    emb = w2.shape[0]
    hidden = w1.shape[0]
    emb_pad = max(128, _round_up(emb, 128))

    w1t = w1.T.astype(jnp.bfloat16)                               # (in, 128)
    b1r = b1.reshape(1, -1).astype(jnp.float32)

    w2t = jnp.zeros((hidden, emb_pad), jnp.float32).at[:, :emb].set(w2.T)
    w2t = w2t.astype(jnp.bfloat16)                                # (128, emb_pad)
    b2r = jnp.zeros((1, emb_pad), jnp.float32).at[:, :emb].set(b2)

    w3t = jnp.zeros((emb_pad, hidden), jnp.float32).at[:emb, :].set(w3.T)
    w3t = w3t.astype(jnp.bfloat16)                                # (emb_pad, 128)
    b3r = b3.reshape(1, -1).astype(jnp.float32)

    w4t = w4.T.astype(jnp.bfloat16)                               # (128, in)
    b4r = b4.reshape(1, -1).astype(jnp.float32)

    return (w1t, b1r, w2t, b2r, w3t, b3r, w4t, b4r)


# --------------------------------------------------------------------------- #
# Wrapper                                                                     #
# --------------------------------------------------------------------------- #
def _choose_tile(batch):
    """Padding-aware tile choice: big tiles, minimal dead rows, >=2 steps for
    megacore once the batch is large enough."""
    nsteps = pl.cdiv(batch, TM_MAX)
    if batch >= MEGACORE_MIN_BATCH:
        nsteps = max(nsteps, 2)
    tm = _round_up(pl.cdiv(batch, nsteps), 8)
    b_pad = _round_up(batch, tm)
    return tm, b_pad


def _build_call(b_pad, tm, input_size, emb, prepared, single_buffer_weights):
    hidden = prepared[0].shape[1]
    emb_pad = prepared[2].shape[1]

    def act_spec(feat):
        return pl.BlockSpec((tm, feat), lambda i: (i, 0))

    if single_buffer_weights:
        def resident(arr):
            # Constant block index -> no re-DMA; single buffer saves VMEM/bookkeeping.
            return pl.BlockSpec(arr.shape, lambda i: (0, 0),
                                pipeline_mode=pl.Buffered(1))
    else:
        def resident(arr):
            return pl.BlockSpec(arr.shape, lambda i: (0, 0))

    flops = 2 * b_pad * (input_size * hidden + hidden * emb_pad
                         + emb_pad * hidden + hidden * input_size)
    # In-kernel HBM traffic only: x read (f32) + out write (f32) + code write (f32)
    # + resident weights/biases read once.
    bytes_accessed = (b_pad * input_size * 4          # x
                      + b_pad * input_size * 4        # out
                      + b_pad * emb * 4               # code
                      + sum(int(a.nbytes) for a in prepared))
    cost = pl.CostEstimate(flops=flops,
                           transcendentals=2 * b_pad * input_size,  # sigmoid: exp + recip
                           bytes_accessed=bytes_accessed)

    return pl.pallas_call(
        autoencoder_kernel,
        out_shape=(
            jax.ShapeDtypeStruct((b_pad, input_size), jnp.float32),  # out
            jax.ShapeDtypeStruct((b_pad, emb), jnp.float32),          # code (true width)
        ),
        grid_spec=pltpu.PrefetchScalarGridSpec(
            num_scalar_prefetch=0,
            grid=(b_pad // tm,),
            in_specs=[act_spec(input_size)] + [resident(a) for a in prepared],
            out_specs=(act_spec(input_size), act_spec(emb)),
        ),
        compiler_params=pltpu.CompilerParams(
            dimension_semantics=("parallel",),      # batch axis -> megacore shardable
            vmem_limit_bytes=48 * 1024 * 1024,      # ~10 MiB used at TM=2048; <=48 MiB safe on v7x
        ),
        cost_estimate=cost,
    )


def autoencoder_forward(x, prepared, embedding_size):
    """Fused forward pass. x: (B, input_size) f32. Returns (out, code) matching
    the PyTorch module's forward()."""
    batch, input_size = x.shape
    tm, b_pad = _choose_tile(batch)
    if b_pad != batch:
        x = jnp.pad(x, ((0, b_pad - batch), (0, 0)))

    call_args = (x,) + tuple(prepared)
    try:
        out, code = _build_call(b_pad, tm, input_size, embedding_size, prepared,
                                single_buffer_weights=True)(*call_args)
    except Exception:
        # pl.Buffered(1) not accepted by this jax version -> default double buffering.
        out, code = _build_call(b_pad, tm, input_size, embedding_size, prepared,
                                single_buffer_weights=False)(*call_args)

    if b_pad != batch:                  # only materialize a slice if we actually padded
        out = out[:batch]
        code = code[:batch]
    return out, code


# --------------------------------------------------------------------------- #
# Init + reference                                                            #
# --------------------------------------------------------------------------- #
def init_params(key, input_size, embedding_size):
    """Deterministic PyTorch-style (U[-1/sqrt(fan_in), 1/sqrt(fan_in)]) init."""
    def linear(key, fan_in, fan_out):
        kw, kb = jax.random.split(key)
        bound = 1.0 / jnp.sqrt(fan_in)
        w = jax.random.uniform(kw, (fan_out, fan_in), jnp.float32, -bound, bound)
        b = jax.random.uniform(kb, (fan_out,), jnp.float32, -bound, bound)
        return w, b

    k1, k2, k3, k4 = jax.random.split(key, 4)
    return (
        linear(k1, input_size, 128),             # enc_linear_1
        linear(k2, 128, embedding_size),         # enc_linear_2
        linear(k3, embedding_size, 128),         # dec_linear_1
        linear(k4, 128, input_size),             # dec_linear_2
    )


def reference_forward(x, params):
    (w1, b1), (w2, b2), (w3, b3), (w4, b4) = params
    h = jnp.maximum(x @ w1.T + b1, 0.0)
    code = h @ w2.T + b2
    h = jnp.maximum(code @ w3.T + b3, 0.0)
    out = jax.nn.sigmoid(h @ w4.T + b4)
    return out, code


# --------------------------------------------------------------------------- #
if __name__ == "__main__":
    input_size = 256
    embedding_size = 32

    key = jax.random.PRNGKey(0)
    kp, kx1, kx2, kx3 = jax.random.split(key, 4)
    params = init_params(kp, input_size, embedding_size)
    prepared = prepare_params(params)   # one-time layout/dtype prep (not per-call)

    # batch=8   : single small tile, zero padding
    # batch=300 : padding-aware tm=304 (~1% dead rows instead of 41%)
    # batch=1536: >=2 grid steps (exercises megacore path / multi-step pipeline)
    for batch, kx in ((8, kx1), (300, kx2), (1536, kx3)):
        x = jax.random.normal(kx, (batch, input_size), jnp.float32)
        out, code = autoencoder_forward(x, prepared, embedding_size)
        jax.block_until_ready((out, code))

        ref_out, ref_code = reference_forward(x, params)
        assert out.shape == (batch, input_size) and out.dtype == jnp.float32
        assert code.shape == (batch, embedding_size) and code.dtype == jnp.float32
        # bf16 MXU operands with f32 accumulation -> slightly looser tolerance.
        assert jnp.allclose(out, ref_out, atol=2e-2, rtol=2e-2), \
            float(jnp.max(jnp.abs(out - ref_out)))
        assert jnp.allclose(code, ref_code, atol=2e-2, rtol=2e-2), \
            float(jnp.max(jnp.abs(code - ref_code)))

    print("KERNEL_OK")
</pallas_src>

<mosaic_0001>
module attributes {stable_mosaic.version = 11 : i64} {
  func.func @autoencoder_kernel(%arg0: i32, %arg1: memref<8x256xf32, #tpu.memory_space<vmem>>, %arg2: memref<256x128xbf16, #tpu.memory_space<vmem>>, %arg3: memref<1x128xf32, #tpu.memory_space<vmem>>, %arg4: memref<128x128xbf16, #tpu.memory_space<vmem>>, %arg5: memref<1x128xf32, #tpu.memory_space<vmem>>, %arg6: memref<128x128xbf16, #tpu.memory_space<vmem>>, %arg7: memref<1x128xf32, #tpu.memory_space<vmem>>, %arg8: memref<128x256xbf16, #tpu.memory_space<vmem>>, %arg9: memref<1x256xf32, #tpu.memory_space<vmem>>, %arg10: memref<8x256xf32, #tpu.memory_space<vmem>>, %arg11: memref<8x32xf32, #tpu.memory_space<vmem>>) attributes {dimension_semantics = [#tpu.dimension_semantics<parallel>], iteration_bounds = array<i64: 1>, scalar_prefetch = 0 : i64, scratch_operands = 0 : i64, tpu.core_type = #tpu.core_type<tc>, window_params = [{transform_indices = @transform_0, window_bounds = array<i64: 8, 256>}, {pipeline_mode = #tpu.pipeline_mode<synchronous>, transform_indices = @transform_1, window_bounds = array<i64: 256, 128>}, {pipeline_mode = #tpu.pipeline_mode<synchronous>, transform_indices = @transform_2, window_bounds = array<i64: 1, 128>}, {pipeline_mode = #tpu.pipeline_mode<synchronous>, transform_indices = @transform_3, window_bounds = array<i64: 128, 128>}, {pipeline_mode = #tpu.pipeline_mode<synchronous>, transform_indices = @transform_4, window_bounds = array<i64: 1, 128>}, {pipeline_mode = #tpu.pipeline_mode<synchronous>, transform_indices = @transform_5, window_bounds = array<i64: 128, 128>}, {pipeline_mode = #tpu.pipeline_mode<synchronous>, transform_indices = @transform_6, window_bounds = array<i64: 1, 128>}, {pipeline_mode = #tpu.pipeline_mode<synchronous>, transform_indices = @transform_7, window_bounds = array<i64: 128, 256>}, {pipeline_mode = #tpu.pipeline_mode<synchronous>, transform_indices = @transform_8, window_bounds = array<i64: 1, 256>}, {transform_indices = @transform_9, window_bounds = array<i64: 8, 256>}, {transform_indices = @transform_10, window_bounds = array<i64: 8, 32>}]} {
    %c0 = arith.constant 0 : index
    %c0_0 = arith.constant 0 : index
    %0 = vector.load %arg1[%c0, %c0_0] : memref<8x256xf32, #tpu.memory_space<vmem>>, vector<8x256xf32>
    %1 = arith.truncf %0 : vector<8x256xf32> to vector<8x256xbf16>
    %c0_1 = arith.constant 0 : index
    %c0_2 = arith.constant 0 : index
    %2 = vector.load %arg2[%c0_1, %c0_2] : memref<256x128xbf16, #tpu.memory_space<vmem>>, vector<256x128xbf16>
    %cst = arith.constant dense<0.000000e+00> : vector<8x128xf32>
    %3 = tpu.matmul %1, %2, %cst {dimension_numbers = #tpu.dot_dimension_numbers<[1], [0], [0], [1], [0, 0, 1, 1], [], []>} : vector<8x256xbf16>, vector<256x128xbf16>, vector<8x128xf32> -> vector<8x128xf32>
    %c0_3 = arith.constant 0 : index
    %c0_4 = arith.constant 0 : index
    %4 = vector.load %arg3[%c0_3, %c0_4] : memref<1x128xf32, #tpu.memory_space<vmem>>, vector<1x128xf32>
    %5 = vector.broadcast %4 : vector<1x128xf32> to vector<8x128xf32>
    %6 = arith.addf %3, %5 : vector<8x128xf32>
    %cst_5 = arith.constant 0.000000e+00 : f32
    %7 = vector.broadcast %cst_5 : f32 to vector<8x128xf32>
    %8 = arith.maximumf %6, %7 : vector<8x128xf32>
    %9 = arith.truncf %8 : vector<8x128xf32> to vector<8x128xbf16>
    %c0_6 = arith.constant 0 : index
    %c0_7 = arith.constant 0 : index
    %10 = vector.load %arg4[%c0_6, %c0_7] : memref<128x128xbf16, #tpu.memory_space<vmem>>, vector<128x128xbf16>
    %cst_8 = arith.constant dense<0.000000e+00> : vector<8x128xf32>
    %11 = tpu.matmul %9, %10, %cst_8 {dimension_numbers = #tpu.dot_dimension_numbers<[1], [0], [0], [1], [0, 0, 1, 1], [], []>} : vector<8x128xbf16>, vector<128x128xbf16>, vector<8x128xf32> -> vector<8x128xf32>
    %c0_9 = arith.constant 0 : index
    %c0_10 = arith.constant 0 : index
    %12 = vector.load %arg5[%c0_9, %c0_10] : memref<1x128xf32, #tpu.memory_space<vmem>>, vector<1x128xf32>
    %13 = vector.broadcast %12 : vector<1x128xf32> to vector<8x128xf32>
    %14 = arith.addf %11, %13 : vector<8x128xf32>
    %15 = vector.extract_strided_slice %14 {offsets = [0, 0], sizes = [8, 32], strides = [1, 1]} : vector<8x128xf32> to vector<8x32xf32>
    %c0_11 = arith.constant 0 : index
    %c0_12 = arith.constant 0 : index
    %16 = vector.load %arg11[%c0_11, %c0_12] : memref<8x32xf32, #tpu.memory_space<vmem>>, vector<8x32xf32>
    tpu.vector_store %arg11[%c0_11, %c0_12], %15 {strides = array<i32>} : memref<8x32xf32, #tpu.memory_space<vmem>>, vector<8x32xf32>,
    %17 = arith.truncf %14 : vector<8x128xf32> to vector<8x128xbf16>
    %c0_13 = arith.constant 0 : index
    %c0_14 = arith.constant 0 : index
    %18 = vector.load %arg6[%c0_13, %c0_14] : memref<128x128xbf16, #tpu.memory_space<vmem>>, vector<128x128xbf16>
    %cst_15 = arith.constant dense<0.000000e+00> : vector<8x128xf32>
    %19 = tpu.matmul %17, %18, %cst_15 {dimension_numbers = #tpu.dot_dimension_numbers<[1], [0], [0], [1], [0, 0, 1, 1], [], []>} : vector<8x128xbf16>, vector<128x128xbf16>, vector<8x128xf32> -> vector<8x128xf32>
    %c0_16 = arith.constant 0 : index
    %c0_17 = arith.constant 0 : index
    %20 = vector.load %arg7[%c0_16, %c0_17] : memref<1x128xf32, #tpu.memory_space<vmem>>, vector<1x128xf32>
    %21 = vector.broadcast %20 : vector<1x128xf32> to vector<8x128xf32>
    %22 = arith.addf %19, %21 : vector<8x128xf32>
    %cst_18 = arith.constant 0.000000e+00 : f32
    %23 = vector.broadcast %cst_18 : f32 to vector<8x128xf32>
    %24 = arith.maximumf %22, %23 : vector<8x128xf32>
    %25 = arith.truncf %24 : vector<8x128xf32> to vector<8x128xbf16>
    %c0_19 = arith.constant 0 : index
    %c0_20 = arith.constant 0 : index
    %26 = vector.load %arg8[%c0_19, %c0_20] : memref<128x256xbf16, #tpu.memory_space<vmem>>, vector<128x256xbf16>
    %cst_21 = arith.constant dense<0.000000e+00> : vector<8x256xf32>
    %27 = tpu.matmul %25, %26, %cst_21 {dimension_numbers = #tpu.dot_dimension_numbers<[1], [0], [0], [1], [0, 0, 1, 1], [], []>} : vector<8x128xbf16>, vector<128x256xbf16>, vector<8x256xf32> -> vector<8x256xf32>
    %c0_22 = arith.constant 0 : index
    %c0_23 = arith.constant 0 : index
    %28 = vector.load %arg9[%c0_22, %c0_23] : memref<1x256xf32, #tpu.memory_space<vmem>>, vector<1x256xf32>
    %29 = vector.broadcast %28 : vector<1x256xf32> to vector<8x256xf32>
    %30 = arith.addf %27, %29 : vector<8x256xf32>
    %31 = arith.negf %30 : vector<8x256xf32>
    %32 = math.exp %31 : vector<8x256xf32>
    %cst_24 = arith.constant 1.000000e+00 : f32
    %33 = vector.broadcast %cst_24 : f32 to vector<8x256xf32>
    %34 = arith.addf %33, %32 : vector<8x256xf32>
    %35 = arith.divf %33, %34 : vector<8x256xf32>
    %c0_25 = arith.constant 0 : index
    %c0_26 = arith.constant 0 : index
    %36 = vector.load %arg10[%c0_25, %c0_26] : memref<8x256xf32, #tpu.memory_space<vmem>>, vector<8x256xf32>
    tpu.vector_store %arg10[%c0_25, %c0_26], %35 {strides = array<i32>} : memref<8x256xf32, #tpu.memory_space<vmem>>, vector<8x256xf32>,
    return
  }
  func.func @transform_0(%arg0: i32) -> (i32, i32) {
    %c0_i32 = arith.constant 0 : i32
    %c0_i32_0 = arith.constant 0 : i32
    return %arg0, %c0_i32 : i32, i32
  }
  func.func @transform_1(%arg0: i32) -> (i32, i32) {
    %c0_i32 = arith.constant 0 : i32
    %c0_i32_0 = arith.constant 0 : i32
    %c0_i32_1 = arith.constant 0 : i32
    return %c0_i32, %c0_i32_0 : i32, i32
  }
  func.func @transform_2(%arg0: i32) -> (i32, i32) {
    %c0_i32 = arith.constant 0 : i32
    %c0_i32_0 = arith.constant 0 : i32
    %c0_i32_1 = arith.constant 0 : i32
    return %c0_i32, %c0_i32_0 : i32, i32
  }
  func.func @transform_3(%arg0: i32) -> (i32, i32) {
    %c0_i32 = arith.constant 0 : i32
    %c0_i32_0 = arith.constant 0 : i32
    %c0_i32_1 = arith.constant 0 : i32
    return %c0_i32, %c0_i32_0 : i32, i32
  }
  func.func @transform_4(%arg0: i32) -> (i32, i32) {
    %c0_i32 = arith.constant 0 : i32
    %c0_i32_0 = arith.constant 0 : i32
    %c0_i32_1 = arith.constant 0 : i32
    return %c0_i32, %c0_i32_0 : i32, i32
  }
  func.func @transform_5(%arg0: i32) -> (i32, i32) {
    %c0_i32 = arith.constant 0 : i32
    %c0_i32_0 = arith.constant 0 : i32
    %c0_i32_1 = arith.constant 0 : i32
    return %c0_i32, %c0_i32_0 : i32, i32
  }
  func.func @transform_6(%arg0: i32) -> (i32, i32) {
    %c0_i32 = arith.constant 0 : i32
    %c0_i32_0 = arith.constant 0 : i32
    %c0_i32_1 = arith.constant 0 : i32
    return %c0_i32, %c0_i32_0 : i32, i32
  }
  func.func @transform_7(%arg0: i32) -> (i32, i32) {
    %c0_i32 = arith.constant 0 : i32
    %c0_i32_0 = arith.constant 0 : i32
    %c0_i32_1 = arith.constant 0 : i32
    return %c0_i32, %c0_i32_0 : i32, i32
  }
  func.func @transform_8(%arg0: i32) -> (i32, i32) {
    %c0_i32 = arith.constant 0 : i32
    %c0_i32_0 = arith.constant 0 : i32
    %c0_i32_1 = arith.constant 0 : i32
    return %c0_i32, %c0_i32_0 : i32, i32
  }
  func.func @transform_9(%arg0: i32) -> (i32, i32) {
    %c0_i32 = arith.constant 0 : i32
    %c0_i32_0 = arith.constant 0 : i32
    return %arg0, %c0_i32 : i32, i32
  }
  func.func @transform_10(%arg0: i32) -> (i32, i32) {
    %c0_i32 = arith.constant 0 : i32
    %c0_i32_0 = arith.constant 0 : i32
    return %arg0, %c0_i32 : i32, i32
  }
}

module attributes {stable_mosaic.version = 11 : i64} {
  func.func @autoencoder_kernel(%arg0: i32, %arg1: memref<8x256xf32, #tpu.memory_space<vmem>>, %arg2: memref<256x128xbf16, #tpu.memory_space<vmem>>, %arg3: memref<1x128xf32, #tpu.memory_space<vmem>>, %arg4: memref<128x128xbf16, #tpu.memory_space<vmem>>, %arg5: memref<1x128xf32, #tpu.memory_space<vmem>>, %arg6: memref<128x128xbf16, #tpu.memory_space<vmem>>, %arg7: memref<1x128xf32, #tpu.memory_space<vmem>>, %arg8: memref<128x256xbf16, #tpu.memory_space<vmem>>, %arg9: memref<1x256xf32, #tpu.memory_space<vmem>>, %arg10: memref<8x256xf32, #tpu.memory_space<vmem>>, %arg11: memref<8x32xf32, #tpu.memory_space<vmem>>) attributes {dimension_semantics = [#tpu.dimension_semantics<parallel>], iteration_bounds = array<i64: 1>, scalar_prefetch = 0 : i64, scratch_operands = 0 : i64, tpu.core_type = #tpu.core_type<tc>, window_params = [{transform_indices = @transform_0, window_bounds = array<i64: 8, 256>}, {pipeline_mode = #tpu.pipeline_mode<synchronous>, transform_indices = @transform_1, window_bounds = array<i64: 256, 128>}, {pipeline_mode = #tpu.pipeline_mode<synchronous>, transform_indices = @transform_2, window_bounds = array<i64: 1, 128>}, {pipeline_mode = #tpu.pipeline_mode<synchronous>, transform_indices = @transform_3, window_bounds = array<i64: 128, 128>}, {pipeline_mode = #tpu.pipeline_mode<synchronous>, transform_indices = @transform_4, window_bounds = array<i64: 1, 128>}, {pipeline_mode = #tpu.pipeline_mode<synchronous>, transform_indices = @transform_5, window_bounds = array<i64: 128, 128>}, {pipeline_mode = #tpu.pipeline_mode<synchronous>, transform_indices = @transform_6, window_bounds = array<i64: 1, 128>}, {pipeline_mode = #tpu.pipeline_mode<synchronous>, transform_indices = @transform_7, window_bounds = array<i64: 128, 256>}, {pipeline_mode = #tpu.pipeline_mode<synchronous>, transform_indices = @transform_8, window_bounds = array<i64: 1, 256>}, {transform_indices = @transform_9, window_bounds = array<i64: 8, 256>}, {transform_indices = @transform_10, window_bounds = array<i64: 8, 32>}]} {
    %c0 = arith.constant 0 : index
    %c0_0 = arith.constant 0 : index
    %0 = vector.load %arg1[%c0, %c0_0] : memref<8x256xf32, #tpu.memory_space<vmem>>, vector<8x256xf32>
    %1 = arith.truncf %0 : vector<8x256xf32> to vector<8x256xbf16>
    %c0_1 = arith.constant 0 : index
    %c0_2 = arith.constant 0 : index
    %2 = vector.load %arg2[%c0_1, %c0_2] : memref<256x128xbf16, #tpu.memory_space<vmem>>, vector<256x128xbf16>
    %cst = arith.constant dense<0.000000e+00> : vector<8x128xf32>
    %3 = tpu.matmul %1, %2, %cst {dimension_numbers = #tpu.dot_dimension_numbers<[1], [0], [0], [1], [0, 0, 1, 1], [], []>} : vector<8x256xbf16>, vector<256x128xbf16>, vector<8x128xf32> -> vector<8x128xf32>
    %c0_3 = arith.constant 0 : index
    %c0_4 = arith.constant 0 : index
    %4 = vector.load %arg3[%c0_3, %c0_4] : memref<1x128xf32, #tpu.memory_space<vmem>>, vector<1x128xf32>
    %5 = vector.broadcast %4 : vector<1x128xf32> to vector<8x128xf32>
    %6 = arith.addf %3, %5 : vector<8x128xf32>
    %cst_5 = arith.constant 0.000000e+00 : f32
    %7 = vector.broadcast %cst_5 : f32 to vector<8x128xf32>
    %8 = arith.maximumf %6, %7 : vector<8x128xf32>
    %9 = arith.truncf %8 : vector<8x128xf32> to vector<8x128xbf16>
    %c0_6 = arith.constant 0 : index
    %c0_7 = arith.constant 0 : index
    %10 = vector.load %arg4[%c0_6, %c0_7] : memref<128x128xbf16, #tpu.memory_space<vmem>>, vector<128x128xbf16>
    %cst_8 = arith.constant dense<0.000000e+00> : vector<8x128xf32>
    %11 = tpu.matmul %9, %10, %cst_8 {dimension_numbers = #tpu.dot_dimension_numbers<[1], [0], [0], [1], [0, 0, 1, 1], [], []>} : vector<8x128xbf16>, vector<128x128xbf16>, vector<8x128xf32> -> vector<8x128xf32>
    %c0_9 = arith.constant 0 : index
    %c0_10 = arith.constant 0 : index
    %12 = vector.load %arg5[%c0_9, %c0_10] : memref<1x128xf32, #tpu.memory_space<vmem>>, vector<1x128xf32>
    %13 = vector.broadcast %12 : vector<1x128xf32> to vector<8x128xf32>
    %14 = arith.addf %11, %13 : vector<8x128xf32>
    %15 = vector.extract_strided_slice %14 {offsets = [0, 0], sizes = [8, 32], strides = [1, 1]} : vector<8x128xf32> to vector<8x32xf32>
    %c0_11 = arith.constant 0 : index
    %c0_12 = arith.constant 0 : index
    %16 = vector.load %arg11[%c0_11, %c0_12] : memref<8x32xf32, #tpu.memory_space<vmem>>, vector<8x32xf32>
    tpu.vector_store %arg11[%c0_11, %c0_12], %15 {strides = array<i32>} : memref<8x32xf32, #tpu.memory_space<vmem>>, vector<8x32xf32>,
    %17 = arith.truncf %14 : vector<8x128xf32> to vector<8x128xbf16>
    %c0_13 = arith.constant 0 : index
    %c0_14 = arith.constant 0 : index
    %18 = vector.load %arg6[%c0_13, %c0_14] : memref<128x128xbf16, #tpu.memory_space<vmem>>, vector<128x128xbf16>
    %cst_15 = arith.constant dense<0.000000e+00> : vector<8x128xf32>
    %19 = tpu.matmul %17, %18, %cst_15 {dimension_numbers = #tpu.dot_dimension_numbers<[1], [0], [0], [1], [0, 0, 1, 1], [], []>} : vector<8x128xbf16>, vector<128x128xbf16>, vector<8x128xf32> -> vector<8x128xf32>
    %c0_16 = arith.constant 0 : index
    %c0_17 = arith.constant 0 : index
    %20 = vector.load %arg7[%c0_16, %c0_17] : memref<1x128xf32, #tpu.memory_space<vmem>>, vector<1x128xf32>
    %21 = vector.broadcast %20 : vector<1x128xf32> to vector<8x128xf32>
    %22 = arith.addf %19, %21 : vector<8x128xf32>
    %cst_18 = arith.constant 0.000000e+00 : f32
    %23 = vector.broadcast %cst_18 : f32 to vector<8x128xf32>
    %24 = arith.maximumf %22, %23 : vector<8x128xf32>
    %25 = arith.truncf %24 : vector<8x128xf32> to vector<8x128xbf16>
    %c0_19 = arith.constant 0 : index
    %c0_20 = arith.constant 0 : index
    %26 = vector.load %arg8[%c0_19, %c0_20] : memref<128x256xbf16, #tpu.memory_space<vmem>>, vector<128x256xbf16>
    %cst_21 = arith.constant dense<0.000000e+00> : vector<8x256xf32>
    %27 = tpu.matmul %25, %26, %cst_21 {dimension_numbers = #tpu.dot_dimension_numbers<[1], [0], [0], [1], [0, 0, 1, 1], [], []>} : vector<8x128xbf16>, vector<128x256xbf16>, vector<8x256xf32> -> vector<8x256xf32>
    %c0_22 = arith.constant 0 : index
    %c0_23 = arith.constant 0 : index
    %28 = vector.load %arg9[%c0_22, %c0_23] : memref<1x256xf32, #tpu.memory_space<vmem>>, vector<1x256xf32>
    %29 = vector.broadcast %28 : vector<1x256xf32> to vector<8x256xf32>
    %30 = arith.addf %27, %29 : vector<8x256xf32>
    %31 = arith.negf %30 : vector<8x256xf32>
    %32 = math.exp %31 : vector<8x256xf32>
    %cst_24 = arith.constant 1.000000e+00 : f32
    %33 = vector.broadcast %cst_24 : f32 to vector<8x256xf32>
    %34 = arith.addf %33, %32 : vector<8x256xf32>
    %35 = arith.divf %33, %34 : vector<8x256xf32>
    %c0_25 = arith.constant 0 : index
    %c0_26 = arith.constant 0 : index
    %36 = vector.load %arg10[%c0_25, %c0_26] : memref<8x256xf32, #tpu.memory_space<vmem>>, vector<8x256xf32>
    tpu.vector_store %arg10[%c0_25, %c0_26], %35 {strides = array<i32>} : memref<8x256xf32, #tpu.memory_space<vmem>>, vector<8x256xf32>,
    return
  }
  func.func @transform_0(%arg0: i32) -> (i32, i32) {
    %c0_i32 = arith.constant 0 : i32
    %c0_i32_0 = arith.constant 0 : i32
    return %arg0, %c0_i32 : i32, i32
  }
  func.func @transform_1(%arg0: i32) -> (i32, i32) {
    %c0_i32 = arith.constant 0 : i32
    %c0_i32_0 = arith.constant 0 : i32
    %c0_i32_1 = arith.constant 0 : i32
    return %c0_i32, %c0_i32_0 : i32, i32
  }
  func.func @transform_2(%arg0: i32) -> (i32, i32) {
    %c0_i32 = arith.constant 0 : i32
    %c0_i32_0 = arith.constant 0 : i32
    %c0_i32_1 = arith.constant 0 : i32
    return %c0_i32, %c0_i32_0 : i32, i32
  }
  func.func @transform_3(%arg0: i32) -> (i32, i32) {
    %c0_i32 = arith.constant 0 : i32
    %c0_i32_0 = arith.constant 0 : i32
    %c0_i32_1 = arith.constant 0 : i32
    return %c0_i32, %c0_i32_0 : i32, i32
  }
  func.func @transform_4(%arg0: i32) -> (i32, i32) {
    %c0_i32 = arith.constant 0 : i32
    %c0_i32_0 = arith.constant 0 : i32
    %c0_i32_1 = arith.constant 0 : i32
    return %c0_i32, %c0_i32_0 : i32, i32
  }
  func.func @transform_5(%arg0: i32) -> (i32, i32) {
    %c0_i32 = arith.constant 0 : i32
    %c0_i32_0 = arith.constant 0 : i32
    %c0_i32_1 = arith.constant 0 : i32
    return %c0_i32, %c0_i32_0 : i32, i32
  }
  func.func @transform_6(%arg0: i32) -> (i32, i32) {
    %c0_i32 = arith.constant 0 : i32
    %c0_i32_0 = arith.constant 0 : i32
    %c0_i32_1 = arith.constant 0 : i32
    return %c0_i32, %c0_i32_0 : i32, i32
  }
  func.func @transform_7(%arg0: i32) -> (i32, i32) {
    %c0_i32 = arith.constant 0 : i32
    %c0_i32_0 = arith.constant 0 : i32
    %c0_i32_1 = arith.constant 0 : i32
    return %c0_i32, %c0_i32_0 : i32, i32
  }
  func.func @transform_8(%arg0: i32) -> (i32, i32) {
    %c0_i32 = arith.constant 0 : i32
    %c0_i32_0 = arith.constant 0 : i32
    %c0_i32_1 = arith.constant 0 : i32
    return %c0_i32, %c0_i32_0 : i32, i32
  }
  func.func @transform_9(%arg0: i32) -> (i32, i32) {
    %c0_i32 = arith.constant 0 : i32
    %c0_i32_0 = arith.constant 0 : i32
    return %arg0, %c0_i32 : i32, i32
  }
  func.func @transform_10(%arg0: i32) -> (i32, i32) {
    %c0_i32 = arith.constant 0 : i32
    %c0_i32_0 = arith.constant 0 : i32
    return %arg0, %c0_i32 : i32, i32
  }
}

</mosaic_0001>

<bundles_post_ra>
// kernel: tpu_custom_call.1
= control target key start
LH: loop header
LB: loop body
LE: loop exit
PB: predicated region body
PF: predicated region fallthrough
CT: control target
= control target key end

     0   :  { %16 = vsyncpa [#allocation3], 0  ;;  %s1239_s0 = inlined_call_operand.hbm [shape: f32[8,256], index: 0, kind: input, shape index: {}]   ;;  %s1240_s1 = inlined_call_operand.hbm [shape: bf16[256,128], index: 1, kind: input, shape index: {}]   ;;  %s1241_s2 = inlined_call_operand.vmem [shape: f32[1,128], index: 2, kind: input, shape index: {}]   ;;  %s1242_s3 = inlined_call_operand.hbm [shape: bf16[128,128], index: 3, kind: input, shape index: {}]   ;;  %s1243_s4 = inlined_call_operand.hbm [shape: f32[1,128], index: 4, kind: input, shape index: {}]   ;;  %s1244_s5 = inlined_call_operand.hbm [shape: bf16[128,128], index: 5, kind: input, shape index: {}]   ;;  %s1245_s6 = inlined_call_operand.vmem [shape: f32[1,128], index: 6, kind: input, shape index: {}]   ;;  %s1246_s7 = inlined_call_operand.hbm [shape: bf16[128,256], index: 7, kind: input, shape index: {}]   ;;  %s1247_s8 = inlined_call_operand.vmem [shape: f32[1,256], index: 8, kind: input, shape index: {}]   ;;  %s1248_s9 = inlined_call_operand.hbm [shape: f32[8,256], index: 9, kind: output, shape index: {0}]   ;;  %s1249_s10 = inlined_call_operand.hbm [shape: f32[8,32], index: 10, kind: output, shape index: {1}]  }
   0x1   :  { %17 = vsyncpa [#allocation6], 0 }
   0x2   :  { %18 = vsyncpa [#allocation9], 0 }
   0x3   :  { %19 = vsyncpa [#allocation12], 0 }
   0x4   :  { %20 = vsyncpa [#allocation4], 0  ;;  %s37_s15 = sshll.u32 %s1240_s1, 4  ;;  %s38_s15 = int_to_ptr.hbm [resolvable:$true] %s37_s15 }
   0x5   :  { %21 = vsyncpa [#allocation15], 0  ;;  %s1130_s16 = smov [#allocation5]   ;;  %s66_s20 = sshll.u32 %s1243_s4, 4  ;;  %s67_s20 = int_to_ptr.hbm [resolvable:$true] %s66_s20 }
   0x6   :  { %s39_s17 = sshll.u32 %s1130_s16, 4  ;;  %s1131_s21 = smov 64   ;;  %s40_s17 = int_to_ptr.vmem [resolvable:$true] %s39_s17 }
   0x7   :  { %s1132_s22 = smov 4   ;;  %s1133_s23 = smov [#allocation8]  }
   0x8   :  { %45 = dma.hbm_to_vmem [thread:$0]  %s38_s15, 2048, %s40_s17, [#allocation6], %s1131_s21, %s1131_s21, %s1132_s22  }
   0x9   :  { %s68_s24 = sshll.u32 %s1133_s23, 4  ;;  %s27_s26 = sshll.u32 %s1239_s0, 4  ;;  %s69_s24 = int_to_ptr.vmem [resolvable:$true] %s68_s24  ;;  %s28_s26 = int_to_ptr.hbm [resolvable:$true] %s27_s26 }
   0xa   :  { %71 = dma.hbm_to_vmem [thread:$0]  %s67_s20, 16, %s69_s24, [#allocation9]  }
   0xb   :  { %s52_s4 = sshll.u32 %s1242_s3, 4  ;;  %s1134_s29 = smov [#allocation2]   ;;  %s53_s4 = int_to_ptr.hbm [resolvable:$true] %s52_s4 }
   0xc   :  { %s29_s30 = sshll.u32 %s1134_s29, 4  ;;  %s1135_s11 = smov [#allocation7]   ;;  %s30_s30 = int_to_ptr.vmem [resolvable:$true] %s29_s30 }
   0xd   :  { %32 = dma.hbm_to_vmem [thread:$0]  %s28_s26, 256, %s30_s30, [#allocation3]  }
   0xe   :  { %s54_s12 = sshll.u32 %s1135_s11, 4  ;;  %s76_s15 = sshll.u32 %s1244_s5, 4  ;;  %s55_s12 = int_to_ptr.vmem [resolvable:$true] %s54_s12  ;;  %s77_s15 = int_to_ptr.hbm [resolvable:$true] %s76_s15 }
   0xf   :  { %60 = dma.hbm_to_vmem [thread:$0]  %s53_s4, 1024, %s55_s12, [#allocation6], %s1131_s21, %s1131_s21, %s1132_s22  }
  0x10   :  { %s91_s3 = sshll.u32 %s1246_s7, 4  ;;  %s1136_s17 = smov [#allocation10]   ;;  %s92_s3 = int_to_ptr.hbm [resolvable:$true] %s91_s3 }
  0x11   :  { %s78_s18 = sshll.u32 %s1136_s17, 4  ;;  %s1137_s19 = smov [#allocation11]   ;;  %s79_s18 = int_to_ptr.vmem [resolvable:$true] %s78_s18 }
  0x12   :  { %84 = dma.hbm_to_vmem [thread:$0]  %s77_s15, 1024, %s79_s18, [#allocation9], %s1131_s21, %s1131_s21, %s1132_s22  }
  0x13   :  { %s93_s5 = sshll.u32 %s1137_s19, 4  ;;  %s1138_s20 = smov 128   ;;  %s94_s5 = int_to_ptr.vmem [resolvable:$true] %s93_s5 }
  0x14   :  { %s1139_s23 = smov 8  }
  0x15   :  { %99 = dma.hbm_to_vmem [thread:$0]  %s92_s3, 2048, %s94_s5, [#allocation12], %s1138_s20, %s1138_s20, %s1139_s23  }
  0x16   :  { %1118 = dma.done.wait [#allocation3], 256  }
  0x17   :  { %1119 = vsyncadd [#allocation3], 4294967040 }
  0x18   :  { %1120 = dma.done.wait [#allocation6], 3072  }
  0x19   :  { %1121 = vsyncadd [#allocation6], 4294964224 }
  0x1a   :  { %1122 = dma.done.wait [#allocation9], 1040  }
  0x1b   :  { %1123 = vsyncadd [#allocation9], 4294966256 }
  0x1c   :  { %1124 = dma.done.wait [#allocation12], 2048  }
  0x1d   :  { %1125 = vsyncadd [#allocation12], 4294965248  ;;  %v862_v0 = vld [vmem:[#allocation5 + $0x38] sm:$0xff]  ;;  %v861_v2 = vld [vmem:[#allocation5 + $0x30] sm:$0xff]  ;;  %vm371_vm0 = vcmask 261120   ;;  %s1140_s24 = smov [#allocation14]  }
  0x1e   :  { %v870_v1 = vld [vmem:[#allocation5 + $0x78] sm:$0xff]  ;;  %262 = vmatpush.bf16.msra.mxu0 %v862_v0  ;;  %v869_v3 = vld [vmem:[#allocation5 + $0x70] sm:$0xff]  ;;  %v860_v4 = vld [vmem:[#allocation5 + $0x28] sm:$0xff]  ;;  %s641_s25 = sshll.u32 %s1140_s24, 4  ;;  %s643_s27 = sshll.u32 %s1249_s10, 4  ;;  %s642_s25 = int_to_ptr.vmem [resolvable:$true] %s641_s25  ;;  %s644_s27 = int_to_ptr.hbm [resolvable:$true] %s643_s27 }
  0x1f   :  { %275 = vmatpush.bf16.msra.mxu1 %v870_v1  ;;  %v868_v5 = vld [vmem:[#allocation5 + $0x68] sm:$0xff]  ;;  %v878_v6 = vld [vmem:[#allocation7 + $0x38] sm:$0xff]  ;;  %v877_v7 = vld [vmem:[#allocation7 + $0x30] sm:$0xff]  ;;  %s632_s30 = sshll.u32 %s1248_s9, 4  ;;  %s633_s30 = int_to_ptr.hbm [resolvable:$true] %s632_s30 }
  0x20   :  { %358 = vmatpush.bf16.msra.mxu2 %v878_v6  ;;  %v859_v8 = vld [vmem:[#allocation5 + $0x20] sm:$0xff]  ;;  %v876_v10 = vld [vmem:[#allocation7 + $0x28] sm:$0xff]  ;;  %v858_v11 = vld [vmem:[#allocation5 + $0x18] sm:$0xff] }
  0x21   :  { %v867_v9 = vld [vmem:[#allocation5 + $0x60] sm:$0xff]  ;;  %v866_v12 = vld [vmem:[#allocation5 + $0x58] sm:$0xff]  ;;  %v857_v14 = vld [vmem:[#allocation5 + $0x10] sm:$0xff] }
  0x22   :  { %263 = vmatpush.bf16.msra.mxu0 %v861_v2  ;;  %v875_v13 = vld [vmem:[#allocation7 + $0x20] sm:$0xff]  ;;  %v865_v15 = vld [vmem:[#allocation5 + $0x50] sm:$0xff]  ;;  %v874_v16 = vld [vmem:[#allocation7 + $0x18] sm:$0xff] }
  0x23   :  { %276 = vmatpush.bf16.msra.mxu1 %v869_v3  ;;  %v856_v17 = vld [vmem:[#allocation5 + $0x8] sm:$0xff]  ;;  %v873_v19 = vld [vmem:[#allocation7 + $0x10] sm:$0xff]  ;;  %v855_v20 = vld [vmem:[#allocation5] sm:$0xff] }
  0x24   :  { %359 = vmatpush.bf16.msra.mxu2 %v877_v7  ;;  %v864_v18 = vld [vmem:[#allocation5 + $0x48] sm:$0xff]  ;;  %v863_v21 = vld [vmem:[#allocation5 + $0x40] sm:$0xff]  ;;  %v126_v22 = vld [vmem:[#allocation2] sm:$0xff] }
  0x25   :  { %v127_v23 = vld [vmem:[#allocation2 + $0x8] sm:$0xff]  ;;  %v128_v24 = vpack.c.bf16 %v126_v22, %v126_v22  ;;  %v872_v26 = vld [vmem:[#allocation7 + $0x8] sm:$0xff]  ;;  %v871_v27 = vld [vmem:[#allocation7] sm:$0xff] }
  0x26   :  { %264 = vmatpush.bf16.msra.mxu0 %v860_v4  ;;  %v129_v25 = vpack.c.bf16 %v127_v23, %v127_v23  ;;  %v886_v28 = vld [vmem:[#allocation10 + $0x38] sm:$0xff]  ;;  %v885_v29 = vld [vmem:[#allocation10 + $0x30] sm:$0xff]  ;;  %v884_v30 = vld [vmem:[#allocation10 + $0x28] sm:$0xff] }
  0x27   :  { %277 = vmatpush.bf16.msra.mxu1 %v868_v5  ;;  %442 = vmatpush.bf16.msra.mxu3 %v886_v28  ;;  %v883_v31 = vld [vmem:[#allocation10 + $0x20] sm:$0xff]  ;;  %v882_v32 = vld [vmem:[#allocation10 + $0x18] sm:$0xff]  ;;  %v881_v33 = vld [vmem:[#allocation10 + $0x10] sm:$0xff] }
  0x28   :  { %360 = vmatpush.bf16.msra.mxu2 %v876_v10  ;;  %v915_v34 = vld [vmem:[%s1241_s2] ss:$0 sm:$0xff]  ;;  %v879_v44 = vld [vmem:[#allocation10] sm:$0xff]  ;;  %v847_v45 = vld [vmem:[#allocation11 + $0x70] sm:$0xf] }
  0x29   :  { %v880_v35 = vld [vmem:[#allocation10 + $0x8] sm:$0xff]  ;;  %v902_v46 = vld [vmem:[#allocation11 + $0x74] sm:$0xf0]  ;;  %v901_v47 = vld [vmem:[#allocation11 + $0x74] sm:$0xf] }
  0x2a   :  { %265 = vmatpush.bf16.msra.mxu0 %v859_v8  ;;  %v848_v48 = vor.u32 %v902_v46, %v847_v45  ;;  %v849_v49 = vld [vmem:[#allocation11 + $0x78] sm:$0xf0]  ;;  %v839_v50 = vld [vmem:[#allocation11 + $0x60] sm:$0xf]  ;;  %v900_v51 = vld [vmem:[#allocation11 + $0x64] sm:$0xf0] }
  0x2b   :  { %278 = vmatpush.bf16.msra.mxu1 %v867_v9  ;;  %443 = vmatpush.bf16.msra.mxu3 %v885_v29  ;;  %v852_v52 = vor.u32 %v901_v47, %v849_v49  ;;  %v899_v53 = vld [vmem:[#allocation11 + $0x64] sm:$0xf]  ;;  %v841_v54 = vld [vmem:[#allocation11 + $0x68] sm:$0xf0]  ;;  %v840_v55 = vor.u32 %v900_v51, %v839_v50  ;;  %v831_v57 = vld [vmem:[#allocation11 + $0x50] sm:$0xf] }
  0x2c   :  { %361 = vmatpush.bf16.msra.mxu2 %v875_v13  ;;  %v844_v56 = vor.u32 %v899_v53, %v841_v54  ;;  %v898_v58 = vld [vmem:[#allocation11 + $0x54] sm:$0xf0]  ;;  %v897_v59 = vld [vmem:[#allocation11 + $0x54] sm:$0xf]  ;;  %v833_v60 = vld [vmem:[#allocation11 + $0x58] sm:$0xf0] }
  0x2d   :  { %v832_v61 = vor.u32 %v898_v58, %v831_v57  ;;  %v836_v62 = vor.u32 %v897_v59, %v833_v60  ;;  %v823_v63 = vld [vmem:[#allocation11 + $0x40] sm:$0xf]  ;;  %v896_v0 = vld [vmem:[#allocation11 + $0x44] sm:$0xf0]  ;;  %v895_v1 = vld [vmem:[#allocation11 + $0x44] sm:$0xf] }
  0x2e   :  { %266 = vmatpush.bf16.msra.mxu0 %v858_v11  ;;  %v825_v2 = vld [vmem:[#allocation11 + $0x48] sm:$0xf0]  ;;  %v824_v3 = vor.u32 %v896_v0, %v823_v63  ;;  %v815_v5 = vld [vmem:[#allocation11 + $0x30] sm:$0xf]  ;;  %v894_v6 = vld [vmem:[#allocation11 + $0x34] sm:$0xf0] }
  0x2f   :  { %279 = vmatpush.bf16.msra.mxu1 %v866_v12  ;;  %444 = vmatpush.bf16.msra.mxu3 %v884_v30  ;;  %v828_v4 = vor.u32 %v895_v1, %v825_v2  ;;  %v893_v7 = vld [vmem:[#allocation11 + $0x34] sm:$0xf]  ;;  %v817_v8 = vld [vmem:[#allocation11 + $0x38] sm:$0xf0]  ;;  %v816_v9 = vor.u32 %v894_v6, %v815_v5  ;;  %v807_v11 = vld [vmem:[#allocation11 + $0x20] sm:$0xf] }
  0x30   :  { %362 = vmatpush.bf16.msra.mxu2 %v874_v16  ;;  %v820_v10 = vor.u32 %v893_v7, %v817_v8  ;;  %v892_v12 = vld [vmem:[#allocation11 + $0x24] sm:$0xf0]  ;;  %v891_v13 = vld [vmem:[#allocation11 + $0x24] sm:$0xf]  ;;  %v799_v22 = vld [vmem:[#allocation11 + $0x10] sm:$0xf] }
  0x31   :  { %v890_v23 = vld [vmem:[#allocation11 + $0x14] sm:$0xf0]  ;;  %v791_v28 = vld [vmem:[#allocation11] sm:$0xf]  ;;  %v888_v29 = vld [vmem:[#allocation11 + $0x4] sm:$0xf0] }
  0x32   :  { %267 = vmatpush.bf16.msra.mxu0 %v857_v14  ;;  %v809_v14 = vld [vmem:[#allocation11 + $0x28] sm:$0xf0]  ;;  %v887_v30 = vld [vmem:[#allocation11 + $0x4] sm:$0xf] }
  0x33   :  { %280 = vmatpush.bf16.msra.mxu1 %v865_v15  ;;  %445 = vmatpush.bf16.msra.mxu3 %v883_v31  ;;  %v808_v15 = vor.u32 %v892_v12, %v807_v11  ;;  %v812_v16 = vor.u32 %v891_v13, %v809_v14  ;;  %v792_v31 = vor.u32 %v888_v29, %v791_v28 }
  0x34   :  { %363 = vmatpush.bf16.msra.mxu2 %v873_v19 }
  0x36   :  { %268 = vmatpush.bf16.msra.mxu0 %v856_v17  ;;  %v916_v17 = vld [vmem:[#allocation8] ss:$0 sm:$0xff] }
  0x37   :  { %281 = vmatpush.bf16.msra.mxu1 %v864_v18  ;;  %446 = vmatpush.bf16.msra.mxu3 %v882_v32  ;;  %v793_v32 = vld [vmem:[#allocation11 + $0x8] sm:$0xf0] }
  0x38   :  { %364 = vmatpush.bf16.msra.mxu2 %v872_v26  ;;  %v801_v26 = vld [vmem:[#allocation11 + $0x18] sm:$0xf0] }
  0x3a   :  { %269 = vmatpush.bf16.msra.mxu0 %v855_v20 }
  0x3b   :  { %282 = vmatpush.bf16.msra.mxu1 %v863_v21  ;;  %447 = vmatpush.bf16.msra.mxu3 %v881_v33  ;;  %v796_v33 = vor.u32 %v887_v30, %v793_v32 }
  0x3c   :  { %365 = vmatpush.bf16.msra.mxu2 %v871_v27 }
  0x3d   :  { %270 = vmatmul.bf16.vlgmr.msra.gmra.mxu0 %v128_v24  ;;  %v889_v24 = vld [vmem:[#allocation11 + $0x14] sm:$0xf] }
  0x3e   :  { %283 = vmatmul.bf16.vlgmr.msra.gmra.mxu1 %v129_v25  ;;  %559 = vmatpush.bf16.msrb.mxu0 %v848_v48  ;;  %v800_v25 = vor.u32 %v890_v23, %v799_v22  ;;  %v804_v27 = vor.u32 %v889_v24, %v801_v26 }
  0x3f   :  { %448 = vmatpush.bf16.msra.mxu3 %v880_v35  ;;  %572 = vmatpush.bf16.msrb.mxu1 %v852_v52 }
  0x42   :  { %560 = vmatpush.bf16.msrb.mxu0 %v840_v55 }
  0x43   :  { %449 = vmatpush.bf16.msra.mxu3 %v879_v44  ;;  %573 = vmatpush.bf16.msrb.mxu1 %v844_v56 }
  0x46   :  { %561 = vmatpush.bf16.msrb.mxu0 %v832_v61 }
  0x47   :  { %574 = vmatpush.bf16.msrb.mxu1 %v836_v62 }
  0x4a   :  { %562 = vmatpush.bf16.msrb.mxu0 %v824_v3 }
  0x4b   :  { %575 = vmatpush.bf16.msrb.mxu1 %v828_v4 }
  0x4e   :  { %563 = vmatpush.bf16.msrb.mxu0 %v816_v9 }
  0x4f   :  { %576 = vmatpush.bf16.msrb.mxu1 %v820_v10 }
  0x52   :  { %564 = vmatpush.bf16.msrb.mxu0 %v808_v15 }
  0x53   :  { %577 = vmatpush.bf16.msrb.mxu1 %v812_v16 }
  0x56   :  { %565 = vmatpush.bf16.msrb.mxu0 %v800_v25 }
  0x57   :  { %578 = vmatpush.bf16.msrb.mxu1 %v804_v27 }
  0x5a   :  { %566 = vmatpush.bf16.msrb.mxu0 %v792_v31 }
  0x5b   :  { %579 = vmatpush.bf16.msrb.mxu1 %v796_v33 }
  0xba   :  { %v271_v36 = vpop.f32.mrf.mxu0 }
  0xbb   :  { %v284_v37 = vpop.f32.mrf.mxu1  ;;  %v272_v38 = vadd.f32 %v915_v34, %v271_v36  ;;  %v917_v34 = vld [vmem:[%s1245_s6] ss:$0 sm:$0xff]  ;;  %s1141_s6 = smov [#allocation13]  }
  0xbd   :  { %v285_v39 = vadd.f32 %v284_v37, %v272_v38 }
  0xbf   :  { %v288_v40 = vmax.f32 %v285_v39, 0.0 }
  0xc1   :  { %v289_v41 = vpack.c.bf16 %v288_v40, %v288_v40  ;;  %v473_v40 = vld [vmem:[%s1247_s8] sm:$0x3]  ;;  %s630_s8 = sshll.u32 %s1141_s6, 4  ;;  %s631_s8 = int_to_ptr.vmem [resolvable:$true] %s630_s8 }
  0xc2   :  { %v273_v42 = vpop.f32.mrf.mxu0 }
  0xc3   :  { %v286_v43 = vpop.f32.mrf.mxu1  ;;  %366 = vmatmul.bf16.vlgmr.msra.gmra.mxu2 %v289_v41  ;;  %v475_v41 = vperm.slane %v473_v40, 0  ;;  %v476_v42 = vperm.slane %v473_v40, 1 }
 0x146   :  { %v367_v18 = vpop.f32.mrf.mxu2 }
 0x147   :  { %v368_v19 = vadd.f32 %v916_v17, %v367_v18 }
 0x149   :  { %v373_v20 = vpack.c.bf16 %v368_v19, %v368_v19  ;;  %372 = vst.msk [vmem:[#allocation14] sm:$0xff] %vm371_vm0, %v368_v19 }
 0x14a   :  { %646 = dma.vmem_to_hbm [thread:$0]  %s642_s25, 128, %s644_s27, [#allocation15]  }
 0x14b   :  { %450 = vmatmul.bf16.vlgmr.msra.gmra.mxu3 %v373_v20 }
 0x14e   :  { %v369_v21 = vpop.f32.mrf.mxu2 }
 0x1ce   :  { %v451_v35 = vpop.f32.mrf.mxu3 }
 0x1cf   :  { %v452_v36 = vadd.f32 %v917_v34, %v451_v35 }
 0x1d1   :  { %v455_v37 = vmax.f32 %v452_v36, 0.0 }
 0x1d3   :  { %v456_v38 = vpack.c.bf16 %v455_v37, %v455_v37 }
 0x1d5   :  { %567 = vmatmul.bf16.vlgmr.msrb.gmra.mxu0 %v456_v38  ;;  %580 = vmatmul.bf16.vlgmr.msrb.gmra.mxu1 %v456_v38 }
 0x1d6   :  { %v453_v39 = vpop.f32.mrf.mxu3 }
 0x252   :  { %v568_v43 = vpop.f32.mrf.mxu0  ;;  %v581_v44 = vpop.f32.mrf.mxu1 }
 0x253   :  { %v569_v45 = vadd.f32 %v568_v43, %v475_v41  ;;  %v582_v46 = vadd.f32 %v581_v44, %v476_v42 }
 0x255   :  { %v853_v47 = vmul.f32 -1.442695, %v569_v45  ;;  %v854_v48 = vmul.f32 -1.442695, %v582_v46 }
 0x257   :  { %918 = vpow2.f32 %v853_v47 }
 0x258   :  { %920 = vpow2.f32 %v854_v48 }
 0x25a   :  { %v570_v49 = vpop.f32.mrf.mxu0  ;;  %v583_v50 = vpop.f32.mrf.mxu1 }
 0x25d   :  { %v919_v51 = vpop.eup %918 }
 0x25e   :  { %v921_v52 = vpop.eup %920  ;;  %v591_v53 = vadd.f32 1.0, %v919_v51 }
 0x25f   :  { %v592_v54 = vadd.f32 1.0, %v921_v52 }
 0x260   :  { %922 = vrcp.f32 %v591_v53  ;;  %v604_v61 = vand.u32 2147483648, %v591_v53  ;;  %v602_v63 = vand.u32 2147483647, %v591_v53  ;;  %vm598_vm3 = vweird.f32 %v591_v53 }
 0x261   :  { %924 = vrcp.f32 %v592_v54  ;;  %v619_v0 = vand.u32 2147483648, %v592_v54  ;;  %v617_v2 = vand.u32 2147483647, %v592_v54  ;;  %vm613_vm5 = vweird.f32 %v592_v54 }
 0x262   :  { %v605_v4 = vor.u32 1.1754944e-38, %v604_v61  ;;  %vm603_vm6 = vcmp.eq.f32.partialorder %v602_v63, 8.507059e+37 }
 0x263   :  { %v620_v7 = vor.u32 1.1754944e-38, %v619_v0  ;;  %vm618_vm8 = vcmp.eq.f32.partialorder %v617_v2, 8.507059e+37 }
 0x266   :  { %v923_v55 = vpop.eup %922 }
 0x267   :  { %v925_v56 = vpop.eup %924  ;;  %v594_v57 = vmul.f32 %v923_v55, %v591_v53  ;;  %vm599_vm1 = vweird.f32 %v923_v55 }
 0x268   :  { %v609_v58 = vmul.f32 %v925_v56, %v592_v54  ;;  %vm614_vm2 = vweird.f32 %v925_v56  ;;  %vm600_vm4 = vmor %vm598_vm3, %vm599_vm1 }
 0x269   :  { %v595_v59 = vsub.f32 1.0, %v594_v57  ;;  %vm615_vm7 = vmor %vm613_vm5, %vm614_vm2 }
 0x26a   :  { %v610_v60 = vsub.f32 1.0, %v609_v58 }
 0x26b   :  { %v596_v62 = vmul.f32 %v923_v55, %v595_v59 }
 0x26c   :  { %v611_v1 = vmul.f32 %v925_v56, %v610_v60 }
 0x26d   :  { %v597_v3 = vadd.f32 %v923_v55, %v596_v62 }
 0x26e   :  { %v612_v5 = vadd.f32 %v925_v56, %v611_v1 }
 0x26f   :  { %v601_v6 = vsel %vm600_vm4, %v923_v55, %v597_v3 }
 0x270   :  { %v606_v8 = vsel %vm603_vm6, %v605_v4, %v601_v6  ;;  %v616_v9 = vsel %vm615_vm7, %v925_v56, %v612_v5 }
 0x271   :  { %v621_v10 = vsel %vm618_vm8, %v620_v7, %v616_v9  ;;  %623 = vst [vmem:[#allocation13] sm:$0xff] %v606_v8 }
 0x272   :  { %624 = vst [vmem:[#allocation13 + $0x8] sm:$0xff] %v621_v10 }
 0x273   :  { %635 = dma.vmem_to_hbm [thread:$0]  %s631_s8, 256, %s633_s30, [#allocation4]  }
 0x274   :  { %1126 = dma.done.wait [#allocation4], 256  }
 0x275   :  { %1127 = vsyncadd [#allocation4], 4294967040 }
 0x276   :  { %1128 = dma.done.wait [#allocation15], 128  }
 0x277   :  { %1129 = vsyncadd [#allocation15], 4294967168 }
 0x278   :  { %655 = vsyncpa [#allocation3], 1 }
 0x279   :  { %656 = vsyncpa [#allocation6], 1 }
 0x27a   :  { %657 = vsyncpa [#allocation9], 1 }
 0x27b   :  { %658 = vsyncpa [#allocation12], 1 }
 0x27c   :  { %659 = vsyncpa [#allocation4], 1 }
 0x27d   :  { %660 = vsyncpa [#allocation15], 1 }

// kernel: tpu_custom_call.1
= control target key start
LH: loop header
LB: loop body
LE: loop exit
PB: predicated region body
PF: predicated region fallthrough
CT: control target
= control target key end

     0   :  { %16 = vsyncpa [#allocation3], 0  ;;  %s1239_s0 = inlined_call_operand.hbm [shape: f32[8,256], index: 0, kind: input, shape index: {}]   ;;  %s1240_s1 = inlined_call_operand.hbm [shape: bf16[256,128], index: 1, kind: input, shape index: {}]   ;;  %s1241_s2 = inlined_call_operand.vmem [shape: f32[1,128], index: 2, kind: input, shape index: {}]   ;;  %s1242_s3 = inlined_call_operand.hbm [shape: bf16[128,128], index: 3, kind: input, shape index: {}]   ;;  %s1243_s4 = inlined_call_operand.hbm [shape: f32[1,128], index: 4, kind: input, shape index: {}]   ;;  %s1244_s5 = inlined_call_operand.hbm [shape: bf16[128,128], index: 5, kind: input, shape index: {}]   ;;  %s1245_s6 = inlined_call_operand.vmem [shape: f32[1,128], index: 6, kind: input, shape index: {}]   ;;  %s1246_s7 = inlined_call_operand.hbm [shape: bf16[128,256], index: 7, kind: input, shape index: {}]   ;;  %s1247_s8 = inlined_call_operand.vmem [shape: f32[1,256], index: 8, kind: input, shape index: {}]   ;;  %s1248_s9 = inlined_call_operand.hbm [shape: f32[8,256], index: 9, kind: output, shape index: {0}]   ;;  %s1249_s10 = inlined_call_operand.hbm [shape: f32[8,32], index: 10, kind: output, shape index: {1}]  }
   0x1   :  { %17 = vsyncpa [#allocation6], 0 }
   0x2   :  { %18 = vsyncpa [#allocation9], 0 }
   0x3   :  { %19 = vsyncpa [#allocation12], 0 }
   0x4   :  { %20 = vsyncpa [#allocation4], 0  ;;  %s37_s15 = sshll.u32 %s1240_s1, 4  ;;  %s38_s15 = int_to_ptr.hbm [resolvable:$true] %s37_s15 }
   0x5   :  { %21 = vsyncpa [#allocation15], 0  ;;  %s1130_s16 = smov [#allocation5]   ;;  %s66_s20 = sshll.u32 %s1243_s4, 4  ;;  %s67_s20 = int_to_ptr.hbm [resolvable:$true] %s66_s20 }
   0x6   :  { %s39_s17 = sshll.u32 %s1130_s16, 4  ;;  %s1131_s21 = smov 64   ;;  %s40_s17 = int_to_ptr.vmem [resolvable:$true] %s39_s17 }
   0x7   :  { %s1132_s22 = smov 4   ;;  %s1133_s23 = smov [#allocation8]  }
   0x8   :  { %45 = dma.hbm_to_vmem [thread:$0]  %s38_s15, 2048, %s40_s17, [#allocation6], %s1131_s21, %s1131_s21, %s1132_s22  }
   0x9   :  { %s68_s24 = sshll.u32 %s1133_s23, 4  ;;  %s27_s26 = sshll.u32 %s1239_s0, 4  ;;  %s69_s24 = int_to_ptr.vmem [resolvable:$true] %s68_s24  ;;  %s28_s26 = int_to_ptr.hbm [resolvable:$true] %s27_s26 }
   0xa   :  { %71 = dma.hbm_to_vmem [thread:$0]  %s67_s20, 16, %s69_s24, [#allocation9]  }
   0xb   :  { %s52_s4 = sshll.u32 %s1242_s3, 4  ;;  %s1134_s29 = smov [#allocation2]   ;;  %s53_s4 = int_to_ptr.hbm [resolvable:$true] %s52_s4 }
   0xc   :  { %s29_s30 = sshll.u32 %s1134_s29, 4  ;;  %s1135_s11 = smov [#allocation7]   ;;  %s30_s30 = int_to_ptr.vmem [resolvable:$true] %s29_s30 }
   0xd   :  { %32 = dma.hbm_to_vmem [thread:$0]  %s28_s26, 256, %s30_s30, [#allocation3]  }
   0xe   :  { %s54_s12 = sshll.u32 %s1135_s11, 4  ;;  %s76_s15 = sshll.u32 %s1244_s5, 4  ;;  %s55_s12 = int_to_ptr.vmem [resolvable:$true] %s54_s12  ;;  %s77_s15 = int_to_ptr.hbm [resolvable:$true] %s76_s15 }
   0xf   :  { %60 = dma.hbm_to_vmem [thread:$0]  %s53_s4, 1024, %s55_s12, [#allocation6], %s1131_s21, %s1131_s21, %s1132_s22  }
  0x10   :  { %s91_s3 = sshll.u32 %s1246_s7, 4  ;;  %s1136_s17 = smov [#allocation10]   ;;  %s92_s3 = int_to_ptr.hbm [resolvable:$true] %s91_s3 }
  0x11   :  { %s78_s18 = sshll.u32 %s1136_s17, 4  ;;  %s1137_s19 = smov [#allocation11]   ;;  %s79_s18 = int_to_ptr.vmem [resolvable:$true] %s78_s18 }
  0x12   :  { %84 = dma.hbm_to_vmem [thread:$0]  %s77_s15, 1024, %s79_s18, [#allocation9], %s1131_s21, %s1131_s21, %s1132_s22  }
  0x13   :  { %s93_s5 = sshll.u32 %s1137_s19, 4  ;;  %s1138_s20 = smov 128   ;;  %s94_s5 = int_to_ptr.vmem [resolvable:$true] %s93_s5 }
  0x14   :  { %s1139_s23 = smov 8  }
  0x15   :  { %99 = dma.hbm_to_vmem [thread:$0]  %s92_s3, 2048, %s94_s5, [#allocation12], %s1138_s20, %s1138_s20, %s1139_s23  }
  0x16   :  { %1118 = dma.done.wait [#allocation3], 256  }
  0x17   :  { %1119 = vsyncadd [#allocation3], 4294967040 }
  0x18   :  { %1120 = dma.done.wait [#allocation6], 3072  }
  0x19   :  { %1121 = vsyncadd [#allocation6], 4294964224 }
  0x1a   :  { %1122 = dma.done.wait [#allocation9], 1040  }
  0x1b   :  { %1123 = vsyncadd [#allocation9], 4294966256 }
  0x1c   :  { %1124 = dma.done.wait [#allocation12], 2048  }
  0x1d   :  { %1125 = vsyncadd [#allocation12], 4294965248  ;;  %v862_v0 = vld [vmem:[#allocation5 + $0x38] sm:$0xff]  ;;  %v861_v2 = vld [vmem:[#allocation5 + $0x30] sm:$0xff]  ;;  %vm371_vm0 = vcmask 261120   ;;  %s1140_s24 = smov [#allocation14]  }
  0x1e   :  { %v870_v1 = vld [vmem:[#allocation5 + $0x78] sm:$0xff]  ;;  %262 = vmatpush.bf16.msra.mxu0 %v862_v0  ;;  %v869_v3 = vld [vmem:[#allocation5 + $0x70] sm:$0xff]  ;;  %v860_v4 = vld [vmem:[#allocation5 + $0x28] sm:$0xff]  ;;  %s641_s25 = sshll.u32 %s1140_s24, 4  ;;  %s643_s27 = sshll.u32 %s1249_s10, 4  ;;  %s642_s25 = int_to_ptr.vmem [resolvable:$true] %s641_s25  ;;  %s644_s27 = int_to_ptr.hbm [resolvable:$true] %s643_s27 }
  0x1f   :  { %275 = vmatpush.bf16.msra.mxu1 %v870_v1  ;;  %v868_v5 = vld [vmem:[#allocation5 + $0x68] sm:$0xff]  ;;  %v878_v6 = vld [vmem:[#allocation7 + $0x38] sm:$0xff]  ;;  %v877_v7 = vld [vmem:[#allocation7 + $0x30] sm:$0xff]  ;;  %s632_s30 = sshll.u32 %s1248_s9, 4  ;;  %s633_s30 = int_to_ptr.hbm [resolvable:$true] %s632_s30 }
  0x20   :  { %358 = vmatpush.bf16.msra.mxu2 %v878_v6  ;;  %v859_v8 = vld [vmem:[#allocation5 + $0x20] sm:$0xff]  ;;  %v876_v10 = vld [vmem:[#allocation7 + $0x28] sm:$0xff]  ;;  %v858_v11 = vld [vmem:[#allocation5 + $0x18] sm:$0xff] }
  0x21   :  { %v867_v9 = vld [vmem:[#allocation5 + $0x60] sm:$0xff]  ;;  %v866_v12 = vld [vmem:[#allocation5 + $0x58] sm:$0xff]  ;;  %v857_v14 = vld [vmem:[#allocation5 + $0x10] sm:$0xff] }
  0x22   :  { %263 = vmatpush.bf16.msra.mxu0 %v861_v2  ;;  %v875_v13 = vld [vmem:[#allocation7 + $0x20] sm:$0xff]  ;;  %v865_v15 = vld [vmem:[#allocation5 + $0x50] sm:$0xff]  ;;  %v874_v16 = vld [vmem:[#allocation7 + $0x18] sm:$0xff] }
  0x23   :  { %276 = vmatpush.bf16.msra.mxu1 %v869_v3  ;;  %v856_v17 = vld [vmem:[#allocation5 + $0x8] sm:$0xff]  ;;  %v873_v19 = vld [vmem:[#allocation7 + $0x10] sm:$0xff]  ;;  %v855_v20 = vld [vmem:[#allocation5] sm:$0xff] }
  0x24   :  { %359 = vmatpush.bf16.msra.mxu2 %v877_v7  ;;  %v864_v18 = vld [vmem:[#allocation5 + $0x48] sm:$0xff]  ;;  %v863_v21 = vld [vmem:[#allocation5 + $0x40] sm:$0xff]  ;;  %v126_v22 = vld [vmem:[#allocation2] sm:$0xff] }
  0x25   :  { %v127_v23 = vld [vmem:[#allocation2 + $0x8] sm:$0xff]  ;;  %v128_v24 = vpack.c.bf16 %v126_v22, %v126_v22  ;;  %v872_v26 = vld [vmem:[#allocation7 + $0x8] sm:$0xff]  ;;  %v871_v27 = vld [vmem:[#allocation7] sm:$0xff] }
  0x26   :  { %264 = vmatpush.bf16.msra.mxu0 %v860_v4  ;;  %v129_v25 = vpack.c.bf16 %v127_v23, %v127_v23  ;;  %v886_v28 = vld [vmem:[#allocation10 + $0x38] sm:$0xff]  ;;  %v885_v29 = vld [vmem:[#allocation10 + $0x30] sm:$0xff]  ;;  %v884_v30 = vld [vmem:[#allocation10 + $0x28] sm:$0xff] }
  0x27   :  { %277 = vmatpush.bf16.msra.mxu1 %v868_v5  ;;  %442 = vmatpush.bf16.msra.mxu3 %v886_v28  ;;  %v883_v31 = vld [vmem:[#allocation10 + $0x20] sm:$0xff]  ;;  %v882_v32 = vld [vmem:[#allocation10 + $0x18] sm:$0xff]  ;;  %v881_v33 = vld [vmem:[#allocation10 + $0x10] sm:$0xff] }
  0x28   :  { %360 = vmatpush.bf16.msra.mxu2 %v876_v10  ;;  %v915_v34 = vld [vmem:[%s1241_s2] ss:$0 sm:$0xff]  ;;  %v879_v44 = vld [vmem:[#allocation10] sm:$0xff]  ;;  %v847_v45 = vld [vmem:[#allocation11 + $0x70] sm:$0xf] }
  0x29   :  { %v880_v35 = vld [vmem:[#allocation10 + $0x8] sm:$0xff]  ;;  %v902_v46 = vld [vmem:[#allocation11 + $0x74] sm:$0xf0]  ;;  %v901_v47 = vld [vmem:[#allocation11 + $0x74] sm:$0xf] }
  0x2a   :  { %265 = vmatpush.bf16.msra.mxu0 %v859_v8  ;;  %v848_v48 = vor.u32 %v902_v46, %v847_v45  ;;  %v849_v49 = vld [vmem:[#allocation11 + $0x78] sm:$0xf0]  ;;  %v839_v50 = vld [vmem:[#allocation11 + $0x60] sm:$0xf]  ;;  %v900_v51 = vld [vmem:[#allocation11 + $0x64] sm:$0xf0] }
  0x2b   :  { %278 = vmatpush.bf16.msra.mxu1 %v867_v9  ;;  %443 = vmatpush.bf16.msra.mxu3 %v885_v29  ;;  %v852_v52 = vor.u32 %v901_v47, %v849_v49  ;;  %v899_v53 = vld [vmem:[#allocation11 + $0x64] sm:$0xf]  ;;  %v841_v54 = vld [vmem:[#allocation11 + $0x68] sm:$0xf0]  ;;  %v840_v55 = vor.u32 %v900_v51, %v839_v50  ;;  %v831_v57 = vld [vmem:[#allocation11 + $0x50] sm:$0xf] }
  0x2c   :  { %361 = vmatpush.bf16.msra.mxu2 %v875_v13  ;;  %v844_v56 = vor.u32 %v899_v53, %v841_v54  ;;  %v898_v58 = vld [vmem:[#allocation11 + $0x54] sm:$0xf0]  ;;  %v897_v59 = vld [vmem:[#allocation11 + $0x54] sm:$0xf]  ;;  %v833_v60 = vld [vmem:[#allocation11 + $0x58] sm:$0xf0] }
  0x2d   :  { %v832_v61 = vor.u32 %v898_v58, %v831_v57  ;;  %v836_v62 = vor.u32 %v897_v59, %v833_v60  ;;  %v823_v63 = vld [vmem:[#allocation11 + $0x40] sm:$0xf]  ;;  %v896_v0 = vld [vmem:[#allocation11 + $0x44] sm:$0xf0]  ;;  %v895_v1 = vld [vmem:[#allocation11 + $0x44] sm:$0xf] }
  0x2e   :  { %266 = vmatpush.bf16.msra.mxu0 %v858_v11  ;;  %v825_v2 = vld [vmem:[#allocation11 + $0x48] sm:$0xf0]  ;;  %v824_v3 = vor.u32 %v896_v0, %v823_v63  ;;  %v815_v5 = vld [vmem:[#allocation11 + $0x30] sm:$0xf]  ;;  %v894_v6 = vld [vmem:[#allocation11 + $0x34] sm:$0xf0] }
  0x2f   :  { %279 = vmatpush.bf16.msra.mxu1 %v866_v12  ;;  %444 = vmatpush.bf16.msra.mxu3 %v884_v30  ;;  %v828_v4 = vor.u32 %v895_v1, %v825_v2  ;;  %v893_v7 = vld [vmem:[#allocation11 + $0x34] sm:$0xf]  ;;  %v817_v8 = vld [vmem:[#allocation11 + $0x38] sm:$0xf0]  ;;  %v816_v9 = vor.u32 %v894_v6, %v815_v5  ;;  %v807_v11 = vld [vmem:[#allocation11 + $0x20] sm:$0xf] }
  0x30   :  { %362 = vmatpush.bf16.msra.mxu2 %v874_v16  ;;  %v820_v10 = vor.u32 %v893_v7, %v817_v8  ;;  %v892_v12 = vld [vmem:[#allocation11 + $0x24] sm:$0xf0]  ;;  %v891_v13 = vld [vmem:[#allocation11 + $0x24] sm:$0xf]  ;;  %v799_v22 = vld [vmem:[#allocation11 + $0x10] sm:$0xf] }
  0x31   :  { %v890_v23 = vld [vmem:[#allocation11 + $0x14] sm:$0xf0]  ;;  %v791_v28 = vld [vmem:[#allocation11] sm:$0xf]  ;;  %v888_v29 = vld [vmem:[#allocation11 + $0x4] sm:$0xf0] }
  0x32   :  { %267 = vmatpush.bf16.msra.mxu0 %v857_v14  ;;  %v809_v14 = vld [vmem:[#allocation11 + $0x28] sm:$0xf0]  ;;  %v887_v30 = vld [vmem:[#allocation11 + $0x4] sm:$0xf] }
  0x33   :  { %280 = vmatpush.bf16.msra.mxu1 %v865_v15  ;;  %445 = vmatpush.bf16.msra.mxu3 %v883_v31  ;;  %v808_v15 = vor.u32 %v892_v12, %v807_v11  ;;  %v812_v16 = vor.u32 %v891_v13, %v809_v14  ;;  %v792_v31 = vor.u32 %v888_v29, %v791_v28 }
  0x34   :  { %363 = vmatpush.bf16.msra.mxu2 %v873_v19 }
  0x36   :  { %268 = vmatpush.bf16.msra.mxu0 %v856_v17  ;;  %v916_v17 = vld [vmem:[#allocation8] ss:$0 sm:$0xff] }
  0x37   :  { %281 = vmatpush.bf16.msra.mxu1 %v864_v18  ;;  %446 = vmatpush.bf16.msra.mxu3 %v882_v32  ;;  %v793_v32 = vld [vmem:[#allocation11 + $0x8] sm:$0xf0] }
  0x38   :  { %364 = vmatpush.bf16.msra.mxu2 %v872_v26  ;;  %v801_v26 = vld [vmem:[#allocation11 + $0x18] sm:$0xf0] }
  0x3a   :  { %269 = vmatpush.bf16.msra.mxu0 %v855_v20 }
  0x3b   :  { %282 = vmatpush.bf16.msra.mxu1 %v863_v21  ;;  %447 = vmatpush.bf16.msra.mxu3 %v881_v33  ;;  %v796_v33 = vor.u32 %v887_v30, %v793_v32 }
  0x3c   :  { %365 = vmatpush.bf16.msra.mxu2 %v871_v27 }
  0x3d   :  { %270 = vmatmul.bf16.vlgmr.msra.gmra.mxu0 %v128_v24  ;;  %v889_v24 = vld [vmem:[#allocation11 + $0x14] sm:$0xf] }
  0x3e   :  { %283 = vmatmul.bf16.vlgmr.msra.gmra.mxu1 %v129_v25  ;;  %559 = vmatpush.bf16.msrb.mxu0 %v848_v48  ;;  %v800_v25 = vor.u32 %v890_v23, %v799_v22  ;;  %v804_v27 = vor.u32 %v889_v24, %v801_v26 }
  0x3f   :  { %448 = vmatpush.bf16.msra.mxu3 %v880_v35  ;;  %572 = vmatpush.bf16.msrb.mxu1 %v852_v52 }
  0x42   :  { %560 = vmatpush.bf16.msrb.mxu0 %v840_v55 }
  0x43   :  { %449 = vmatpush.bf16.msra.mxu3 %v879_v44  ;;  %573 = vmatpush.bf16.msrb.mxu1 %v844_v56 }
  0x46   :  { %561 = vmatpush.bf16.msrb.mxu0 %v832_v61 }
  0x47   :  { %574 = vmatpush.bf16.msrb.mxu1 %v836_v62 }
  0x4a   :  { %562 = vmatpush.bf16.msrb.mxu0 %v824_v3 }
  0x4b   :  { %575 = vmatpush.bf16.msrb.mxu1 %v828_v4 }
  0x4e   :  { %563 = vmatpush.bf16.msrb.mxu0 %v816_v9 }
  0x4f   :  { %576 = vmatpush.bf16.msrb.mxu1 %v820_v10 }
  0x52   :  { %564 = vmatpush.bf16.msrb.mxu0 %v808_v15 }
  0x53   :  { %577 = vmatpush.bf16.msrb.mxu1 %v812_v16 }
  0x56   :  { %565 = vmatpush.bf16.msrb.mxu0 %v800_v25 }
  0x57   :  { %578 = vmatpush.bf16.msrb.mxu1 %v804_v27 }
  0x5a   :  { %566 = vmatpush.bf16.msrb.mxu0 %v792_v31 }
  0x5b   :  { %579 = vmatpush.bf16.msrb.mxu1 %v796_v33 }
  0xba   :  { %v271_v36 = vpop.f32.mrf.mxu0 }
  0xbb   :  { %v284_v37 = vpop.f32.mrf.mxu1  ;;  %v272_v38 = vadd.f32 %v915_v34, %v271_v36  ;;  %v917_v34 = vld [vmem:[%s1245_s6] ss:$0 sm:$0xff]  ;;  %s1141_s6 = smov [#allocation13]  }
  0xbd   :  { %v285_v39 = vadd.f32 %v284_v37, %v272_v38 }
  0xbf   :  { %v288_v40 = vmax.f32 %v285_v39, 0.0 }
  0xc1   :  { %v289_v41 = vpack.c.bf16 %v288_v40, %v288_v40  ;;  %v473_v40 = vld [vmem:[%s1247_s8] sm:$0x3]  ;;  %s630_s8 = sshll.u32 %s1141_s6, 4  ;;  %s631_s8 = int_to_ptr.vmem [resolvable:$true] %s630_s8 }
  0xc2   :  { %v273_v42 = vpop.f32.mrf.mxu0 }
  0xc3   :  { %v286_v43 = vpop.f32.mrf.mxu1  ;;  %366 = vmatmul.bf16.vlgmr.msra.gmra.mxu2 %v289_v41  ;;  %v475_v41 = vperm.slane %v473_v40, 0  ;;  %v476_v42 = vperm.slane %v473_v40, 1 }
 0x146   :  { %v367_v18 = vpop.f32.mrf.mxu2 }
 0x147   :  { %v368_v19 = vadd.f32 %v916_v17, %v367_v18 }
 0x149   :  { %v373_v20 = vpack.c.bf16 %v368_v19, %v368_v19  ;;  %372 = vst.msk [vmem:[#allocation14] sm:$0xff] %vm371_vm0, %v368_v19 }
 0x14a   :  { %646 = dma.vmem_to_hbm [thread:$0]  %s642_s25, 128, %s644_s27, [#allocation15]  }
 0x14b   :  { %450 = vmatmul.bf16.vlgmr.msra.gmra.mxu3 %v373_v20 }
 0x14e   :  { %v369_v21 = vpop.f32.mrf.mxu2 }
 0x1ce   :  { %v451_v35 = vpop.f32.mrf.mxu3 }
 0x1cf   :  { %v452_v36 = vadd.f32 %v917_v34, %v451_v35 }
 0x1d1   :  { %v455_v37 = vmax.f32 %v452_v36, 0.0 }
 0x1d3   :  { %v456_v38 = vpack.c.bf16 %v455_v37, %v455_v37 }
 0x1d5   :  { %567 = vmatmul.bf16.vlgmr.msrb.gmra.mxu0 %v456_v38  ;;  %580 = vmatmul.bf16.vlgmr.msrb.gmra.mxu1 %v456_v38 }
 0x1d6   :  { %v453_v39 = vpop.f32.mrf.mxu3 }
 0x252   :  { %v568_v43 = vpop.f32.mrf.mxu0  ;;  %v581_v44 = vpop.f32.mrf.mxu1 }
 0x253   :  { %v569_v45 = vadd.f32 %v568_v43, %v475_v41  ;;  %v582_v46 = vadd.f32 %v581_v44, %v476_v42 }
 0x255   :  { %v853_v47 = vmul.f32 -1.442695, %v569_v45  ;;  %v854_v48 = vmul.f32 -1.442695, %v582_v46 }
 0x257   :  { %918 = vpow2.f32 %v853_v47 }
 0x258   :  { %920 = vpow2.f32 %v854_v48 }
 0x25a   :  { %v570_v49 = vpop.f32.mrf.mxu0  ;;  %v583_v50 = vpop.f32.mrf.mxu1 }
 0x25d   :  { %v919_v51 = vpop.eup %918 }
 0x25e   :  { %v921_v52 = vpop.eup %920  ;;  %v591_v53 = vadd.f32 1.0, %v919_v51 }
 0x25f   :  { %v592_v54 = vadd.f32 1.0, %v921_v52 }
 0x260   :  { %922 = vrcp.f32 %v591_v53  ;;  %v604_v61 = vand.u32 2147483648, %v591_v53  ;;  %v602_v63 = vand.u32 2147483647, %v591_v53  ;;  %vm598_vm3 = vweird.f32 %v591_v53 }
 0x261   :  { %924 = vrcp.f32 %v592_v54  ;;  %v619_v0 = vand.u32 2147483648, %v592_v54  ;;  %v617_v2 = vand.u32 2147483647, %v592_v54  ;;  %vm613_vm5 = vweird.f32 %v592_v54 }
 0x262   :  { %v605_v4 = vor.u32 1.1754944e-38, %v604_v61  ;;  %vm603_vm6 = vcmp.eq.f32.partialorder %v602_v63, 8.507059e+37 }
 0x263   :  { %v620_v7 = vor.u32 1.1754944e-38, %v619_v0  ;;  %vm618_vm8 = vcmp.eq.f32.partialorder %v617_v2, 8.507059e+37 }
 0x266   :  { %v923_v55 = vpop.eup %922 }
 0x267   :  { %v925_v56 = vpop.eup %924  ;;  %v594_v57 = vmul.f32 %v923_v55, %v591_v53  ;;  %vm599_vm1 = vweird.f32 %v923_v55 }
 0x268   :  { %v609_v58 = vmul.f32 %v925_v56, %v592_v54  ;;  %vm614_vm2 = vweird.f32 %v925_v56  ;;  %vm600_vm4 = vmor %vm598_vm3, %vm599_vm1 }
 0x269   :  { %v595_v59 = vsub.f32 1.0, %v594_v57  ;;  %vm615_vm7 = vmor %vm613_vm5, %vm614_vm2 }
 0x26a   :  { %v610_v60 = vsub.f32 1.0, %v609_v58 }
 0x26b   :  { %v596_v62 = vmul.f32 %v923_v55, %v595_v59 }
 0x26c   :  { %v611_v1 = vmul.f32 %v925_v56, %v610_v60 }
 0x26d   :  { %v597_v3 = vadd.f32 %v923_v55, %v596_v62 }
 0x26e   :  { %v612_v5 = vadd.f32 %v925_v56, %v611_v1 }
 0x26f   :  { %v601_v6 = vsel %vm600_vm4, %v923_v55, %v597_v3 }
 0x270   :  { %v606_v8 = vsel %vm603_vm6, %v605_v4, %v601_v6  ;;  %v616_v9 = vsel %vm615_vm7, %v925_v56, %v612_v5 }
 0x271   :  { %v621_v10 = vsel %vm618_vm8, %v620_v7, %v616_v9  ;;  %623 = vst [vmem:[#allocation13] sm:$0xff] %v606_v8 }
 0x272   :  { %624 = vst [vmem:[#allocation13 + $0x8] sm:$0xff] %v621_v10 }
 0x273   :  { %635 = dma.vmem_to_hbm [thread:$0]  %s631_s8, 256, %s633_s30, [#allocation4]  }
 0x274   :  { %1126 = dma.done.wait [#allocation4], 256  }
 0x275   :  { %1127 = vsyncadd [#allocation4], 4294967040 }
 0x276   :  { %1128 = dma.done.wait [#allocation15], 128  }
 0x277   :  { %1129 = vsyncadd [#allocation15], 4294967168 }
 0x278   :  { %655 = vsyncpa [#allocation3], 1 }
 0x279   :  { %656 = vsyncpa [#allocation6], 1 }
 0x27a   :  { %657 = vsyncpa [#allocation9], 1 }
 0x27b   :  { %658 = vsyncpa [#allocation12], 1 }
 0x27c   :  { %659 = vsyncpa [#allocation4], 1 }
 0x27d   :  { %660 = vsyncpa [#allocation15], 1 }

</bundles_post_ra>
